<compile_context>
chip_gen: v6e
topology: v6e:2x2x1
jax: 0.10.0
libtpu: 0.0.40
codegen_flags: <defaults>
</compile_context>

<pallas_src>
import functools

import jax
import jax.numpy as jnp
from jax.experimental import pallas as pl
from jax.experimental.pallas import tpu as pltpu


def _round_up(x: int, m: int) -> int:
    return ((x + m - 1) // m) * m


def _cdiv(a: int, b: int) -> int:
    return -(-a // b)


@functools.lru_cache(maxsize=None)
def _vmem_capacity_bytes() -> int:
    """Per-TensorCore VMEM capacity; conservative 64 MiB fallback (v7x)."""
    try:
        info = pltpu.get_tpu_info()
        for attr in ("vmem_capacity_bytes", "vmem_bytes", "vmem_size_bytes"):
            v = getattr(info, attr, None)
            if v:
                return int(v)
    except Exception:
        pass
    return 64 * 1024 * 1024


def _footprint(tr, tk, wbufs, cx_bytes, out_bytes, w_bytes, d_model_p, with_acc):
    """Static VMEM footprint estimate (bytes) for one tiling choice."""
    io = 2 * tr * d_model_p * (cx_bytes + out_bytes)      # x/out tiles, 2 bufs each
    wts = wbufs * (2 * d_model_p * tk + tk) * w_bytes     # W1 cols + W2 rows + b1
    wts += d_model_p * w_bytes                            # b2 (constant block)
    acc = tr * d_model_p * 4 if with_acc else 0           # f32 accumulator scratch
    h = tr * tk * 4                                       # relu(x@W1+b1) intermediate
    return io + wts + acc + h


def _choose_tiling(n_tokens, d_model, d_ff, cx_bytes, out_bytes, w_bytes,
                   sublane, vmem_cap):
    """Static tiling decision against a per-generation VMEM budget."""
    d_model_p = _round_up(d_model, 128)
    d_ff_p = _round_up(d_ff, 128)
    budget = int(0.70 * vmem_cap)
    max_rows = _round_up(max(n_tokens, sublane), sublane)

    # ---- Plan A: weights fully resident (nk == 1, single-buffered) --------
    for tr_try in (512, 256, 128):
        tr = min(_round_up(tr_try, sublane), max_rows)
        need = _footprint(tr, d_ff_p, 1, cx_bytes, out_bytes, w_bytes,
                          d_model_p, with_acc=False)
        if need <= budget:
            return dict(tr=tr, tk=d_ff_p, nk=1, d_model_p=d_model_p,
                        d_ff_p=d_ff_p, weight_bufs=1, vmem_needed=need)

    # ---- Plan B: stream weights over a trailing reduction axis ------------
    big_vmem = vmem_cap >= 96 * 1024 * 1024   # v5e/v6e: room for a 3-deep pipe
    for tr_try in (1024, 512, 256, 128, 64, 32, 16, 8):
        tr = min(_round_up(tr_try, sublane), max_rows)
        for wbufs in ((3, 2) if big_vmem else (2,)):
            fixed = (2 * tr * d_model_p * (cx_bytes + out_bytes)
                     + tr * d_model_p * 4 + d_model_p * w_bytes)
            per_col = wbufs * (2 * d_model_p + 1) * w_bytes + tr * 4
            tk_max = (budget - fixed) // per_col
            tk_max = (tk_max // 128) * 128
            if tk_max < 128:
                continue
            tk_max = min(tk_max, d_ff_p)
            nk = _cdiv(d_ff_p, tk_max)                 # even split of d_ff_p:
            tk = _round_up(_cdiv(d_ff_p, nk), 128)     # avoids the ~2x padding cliff
            need = _footprint(tr, tk, wbufs, cx_bytes, out_bytes, w_bytes,
                              d_model_p, with_acc=True)
            if need <= budget:
                return dict(tr=tr, tk=tk, nk=nk, d_model_p=d_model_p,
                            d_ff_p=nk * tk, weight_bufs=wbufs, vmem_needed=need)

    # ---- fallback: minimal tiles (rarely reached) --------------------------
    tr = min(_round_up(8, sublane), max_rows)
    tk = 128
    nk = _cdiv(d_ff_p, tk)
    need = _footprint(tr, tk, 2, cx_bytes, out_bytes, w_bytes, d_model_p, True)
    return dict(tr=tr, tk=tk, nk=nk, d_model_p=d_model_p, d_ff_p=nk * tk,
                weight_bufs=2, vmem_needed=need)


def _pad2d(a, rows, cols):
    pr, pc = rows - a.shape[0], cols - a.shape[1]
    if pr == 0 and pc == 0:
        return a                                   # skip no-op HBM round trip
    return jnp.pad(a, ((0, pr), (0, pc)))


# ---------------------------------------------------------------------------
# Kernels
# ---------------------------------------------------------------------------
def _ffn_kernel_resident(x_ref, w1_ref, b1_ref, w2_ref, b2_ref, o_ref):
    # Weights fully resident in VMEM; one fused pass per row tile.
    h = jnp.dot(x_ref[...], w1_ref[...], preferred_element_type=jnp.float32)
    h = jnp.maximum(h + b1_ref[...].astype(jnp.float32), 0.0)   # bias + ReLU
    # Dropout == identity (eval mode).
    # TODO(synk): training-mode dropout (pltpu.prng_seed + prng_random_bits mask).
    y = jnp.dot(h.astype(w2_ref.dtype), w2_ref[...],
                preferred_element_type=jnp.float32)
    o_ref[...] = (y + b2_ref[...].astype(jnp.float32)).astype(o_ref.dtype)


def _ffn_kernel_split(x_ref, w1_ref, b1_ref, w2_ref, b2_ref, o_ref, acc_ref):
    # d_ff split into nk reduction tiles; f32 accumulator across the k axis.
    k = pl.program_id(1)

    @pl.when(k == 0)
    def _():
        acc_ref[...] = jnp.zeros_like(acc_ref)

    h = jnp.dot(x_ref[...], w1_ref[...], preferred_element_type=jnp.float32)
    h = jnp.maximum(h + b1_ref[...].astype(jnp.float32), 0.0)   # bias + ReLU
    # Dropout == identity (eval mode).
    acc_ref[...] += jnp.dot(h.astype(w2_ref.dtype), w2_ref[...],
                            preferred_element_type=jnp.float32)

    @pl.when(k == pl.num_programs(1) - 1)
    def _():
        o_ref[...] = (acc_ref[...]
                      + b2_ref[...].astype(jnp.float32)).astype(o_ref.dtype)


# ---------------------------------------------------------------------------
# Wrapper
# ---------------------------------------------------------------------------
@jax.jit
def positionwise_feed_forward(x, w1, b1, w2, b2):
    """x: (batch, seq, d_model) -> (batch, seq, d_model).

    Weights are stored (in_features, out_features): x @ w1 == x @ W1_pt.T.
    """
    batch, seq, d_model = x.shape
    d_ff = w1.shape[1]
    n_tokens = batch * seq

    out_dtype = x.dtype
    compute_dtype = w1.dtype
    cx_bytes = jnp.dtype(compute_dtype).itemsize
    out_bytes = jnp.dtype(out_dtype).itemsize
    w_bytes = jnp.dtype(w1.dtype).itemsize
    sublane = 16 if compute_dtype == jnp.bfloat16 else 8

    vmem_cap = _vmem_capacity_bytes()
    plan = _choose_tiling(n_tokens, d_model, d_ff, cx_bytes, out_bytes,
                          w_bytes, sublane, vmem_cap)
    tr, tk, nk = plan["tr"], plan["tk"], plan["nk"]
    d_model_p, d_ff_p = plan["d_model_p"], plan["d_ff_p"]
    wbufs = plan["weight_bufs"]

    n_tok_p = _round_up(n_tokens, tr)
    n_row_tiles = n_tok_p // tr

    # ---- operand prep: cast once, pad only when needed ---------------------
    x2d = x.reshape(n_tokens, d_model)
    if x2d.dtype != compute_dtype:
        x2d = x2d.astype(compute_dtype)        # halve x DMA for f32-act/bf16-w
    x2d = _pad2d(x2d, n_tok_p, d_model_p)
    w1p = _pad2d(w1, d_model_p, d_ff_p)
    b1p = _pad2d(b1.reshape(1, d_ff), 1, d_ff_p)
    w2p = _pad2d(w2, d_ff_p, d_model_p)
    b2p = _pad2d(b2.reshape(1, d_model), 1, d_model_p)

    # ---- VMEM limit + cost estimate (static python ints) -------------------
    vmem_limit = int(min(max(int(plan["vmem_needed"] * 1.25), 32 * 1024 * 1024),
                         int(0.9 * vmem_cap)))
    weight_bytes_total = (2 * d_model * d_ff + d_ff + d_model) * w_bytes
    cost = pl.CostEstimate(
        flops=4 * n_tokens * d_model * d_ff,            # two matmuls
        transcendentals=0,
        bytes_accessed=int(n_tokens * d_model * (cx_bytes + out_bytes)
                           + weight_bytes_total * (n_row_tiles if nk > 1 else 1)),
    )

    if nk == 1:
        # Plan A: resident weights, 1-D "parallel" grid, no accumulator.
        grid = (n_row_tiles,)
        const = pl.Buffered(1)
        in_specs = [
            pl.BlockSpec((tr, d_model_p), lambda i: (i, 0)),                  # x
            pl.BlockSpec((d_model_p, d_ff_p), lambda i: (0, 0),
                         pipeline_mode=const),                                # W1
            pl.BlockSpec((1, d_ff_p), lambda i: (0, 0), pipeline_mode=const), # b1
            pl.BlockSpec((d_ff_p, d_model_p), lambda i: (0, 0),
                         pipeline_mode=const),                                # W2
            pl.BlockSpec((1, d_model_p), lambda i: (0, 0),
                         pipeline_mode=const),                                # b2
        ]
        out_specs = pl.BlockSpec((tr, d_model_p), lambda i: (i, 0))
        scratch_shapes = []
        kernel = _ffn_kernel_resident
        dims = ("parallel",)
    else:
        # Plan B: streamed weights, trailing "arbitrary" reduction axis.
        grid = (n_row_tiles, nk)
        wmode = pl.Buffered(wbufs) if wbufs != 2 else None
        in_specs = [
            pl.BlockSpec((tr, d_model_p), lambda i, k: (i, 0)),               # x
            pl.BlockSpec((d_model_p, tk), lambda i, k: (0, k),
                         pipeline_mode=wmode),                                # W1
            pl.BlockSpec((1, tk), lambda i, k: (0, k)),                       # b1
            pl.BlockSpec((tk, d_model_p), lambda i, k: (k, 0),
                         pipeline_mode=wmode),                                # W2
            pl.BlockSpec((1, d_model_p), lambda i, k: (0, 0),
                         pipeline_mode=pl.Buffered(1)),                       # b2
        ]
        out_specs = pl.BlockSpec((tr, d_model_p), lambda i, k: (i, 0))
        scratch_shapes = [pltpu.VMEM((tr, d_model_p), jnp.float32)]
        kernel = _ffn_kernel_split
        dims = ("parallel", "arbitrary")

    out2d = pl.pallas_call(
        kernel,
        out_shape=jax.ShapeDtypeStruct((n_tok_p, d_model_p), out_dtype),
        grid_spec=pltpu.PrefetchScalarGridSpec(
            num_scalar_prefetch=0,
            grid=grid,
            in_specs=in_specs,
            out_specs=out_specs,
            scratch_shapes=scratch_shapes,
        ),
        compiler_params=pltpu.CompilerParams(
            dimension_semantics=dims,
            vmem_limit_bytes=vmem_limit,
        ),
        cost_estimate=cost,
    )(x2d, w1p, b1p, w2p, b2p)

    if n_tok_p == n_tokens and d_model_p == d_model:
        return out2d.reshape(batch, seq, d_model)
    return out2d[:n_tokens, :d_model].reshape(batch, seq, d_model)


def init_params(key, d_model, d_ff, dtype=jnp.float32):
    """Deterministic nn.Linear-style init (uniform(-1/sqrt(fan_in), 1/sqrt(fan_in)))."""
    k1, k2, k3, k4 = jax.random.split(key, 4)
    bound1 = 1.0 / (d_model ** 0.5)
    bound2 = 1.0 / (d_ff ** 0.5)
    # stored as (in, out) so the kernel computes x @ W  (== x @ W_pt.T)
    w1 = jax.random.uniform(k1, (d_model, d_ff), dtype, -bound1, bound1)
    b1 = jax.random.uniform(k2, (d_ff,), dtype, -bound1, bound1)
    w2 = jax.random.uniform(k3, (d_ff, d_model), dtype, -bound2, bound2)
    b2 = jax.random.uniform(k4, (d_model,), dtype, -bound2, bound2)
    return w1, b1, w2, b2


if __name__ == "__main__":
    key = jax.random.PRNGKey(0)
    batch, seq, d_model, d_ff = 2, 8, 32, 64

    kx, kp = jax.random.split(key)
    x = jax.random.normal(kx, (batch, seq, d_model), jnp.float32)
    w1, b1, w2, b2 = init_params(kp, d_model, d_ff)

    out = jax.block_until_ready(positionwise_feed_forward(x, w1, b1, w2, b2))

    # pure-JAX reference (dropout = identity in eval mode)
    ref = (jnp.maximum(x.reshape(-1, d_model) @ w1 + b1, 0.0) @ w2 + b2)
    ref = ref.reshape(batch, seq, d_model)
    assert out.shape == (batch, seq, d_model)
    err = float(jnp.max(jnp.abs(out - ref)))
    assert jnp.allclose(out, ref, atol=1e-4, rtol=1e-4), f"f32 max abs err {err}"

    # bf16 path: bf16 operands on the MXU with f32 accumulation (looser tolerance).
    xb = x.astype(jnp.bfloat16)
    w1b, b1b, w2b, b2b = (t.astype(jnp.bfloat16) for t in (w1, b1, w2, b2))
    out_bf16 = jax.block_until_ready(
        positionwise_feed_forward(xb, w1b, b1b, w2b, b2b))
    assert out_bf16.shape == (batch, seq, d_model)
    assert jnp.allclose(out_bf16.astype(jnp.float32), ref, atol=0.1, rtol=0.1)

    print("KERNEL_OK")
</pallas_src>

<mosaic_0001>
module attributes {stable_mosaic.version = 11 : i64} {
  func.func @_ffn_kernel_resident(%arg0: i32, %arg1: memref<16x128xf32, #tpu.memory_space<vmem>>, %arg2: memref<128x128xf32, #tpu.memory_space<vmem>>, %arg3: memref<1x128xf32, #tpu.memory_space<vmem>>, %arg4: memref<128x128xf32, #tpu.memory_space<vmem>>, %arg5: memref<1x128xf32, #tpu.memory_space<vmem>>, %arg6: memref<16x128xf32, #tpu.memory_space<vmem>>) attributes {dimension_semantics = [#tpu.dimension_semantics<parallel>], iteration_bounds = array<i64: 1>, scalar_prefetch = 0 : i64, scratch_operands = 0 : i64, tpu.core_type = #tpu.core_type<tc>, window_params = [{transform_indices = @transform_0, window_bounds = array<i64: 16, 128>}, {pipeline_mode = #tpu.pipeline_mode<synchronous>, transform_indices = @transform_1, window_bounds = array<i64: 128, 128>}, {pipeline_mode = #tpu.pipeline_mode<synchronous>, transform_indices = @transform_2, window_bounds = array<i64: 1, 128>}, {pipeline_mode = #tpu.pipeline_mode<synchronous>, transform_indices = @transform_3, window_bounds = array<i64: 128, 128>}, {pipeline_mode = #tpu.pipeline_mode<synchronous>, transform_indices = @transform_4, window_bounds = array<i64: 1, 128>}, {transform_indices = @transform_5, window_bounds = array<i64: 16, 128>}]} {
    %c0 = arith.constant 0 : index
    %c0_0 = arith.constant 0 : index
    %0 = vector.load %arg1[%c0, %c0_0] : memref<16x128xf32, #tpu.memory_space<vmem>>, vector<16x128xf32>
    %c0_1 = arith.constant 0 : index
    %c0_2 = arith.constant 0 : index
    %1 = vector.load %arg2[%c0_1, %c0_2] : memref<128x128xf32, #tpu.memory_space<vmem>>, vector<128x128xf32>
    %cst = arith.constant dense<0.000000e+00> : vector<16x128xf32>
    %2 = tpu.matmul %0, %1, %cst {dimension_numbers = #tpu.dot_dimension_numbers<[1], [0], [0], [1], [0, 0, 1, 1], [], []>} : vector<16x128xf32>, vector<128x128xf32>, vector<16x128xf32> -> vector<16x128xf32>
    %c0_3 = arith.constant 0 : index
    %c0_4 = arith.constant 0 : index
    %3 = vector.load %arg3[%c0_3, %c0_4] : memref<1x128xf32, #tpu.memory_space<vmem>>, vector<1x128xf32>
    %4 = vector.broadcast %3 : vector<1x128xf32> to vector<16x128xf32>
    %5 = arith.addf %2, %4 : vector<16x128xf32>
    %cst_5 = arith.constant 0.000000e+00 : f32
    %6 = vector.broadcast %cst_5 : f32 to vector<16x128xf32>
    %7 = arith.maximumf %5, %6 : vector<16x128xf32>
    %c0_6 = arith.constant 0 : index
    %c0_7 = arith.constant 0 : index
    %8 = vector.load %arg4[%c0_6, %c0_7] : memref<128x128xf32, #tpu.memory_space<vmem>>, vector<128x128xf32>
    %cst_8 = arith.constant dense<0.000000e+00> : vector<16x128xf32>
    %9 = tpu.matmul %7, %8, %cst_8 {dimension_numbers = #tpu.dot_dimension_numbers<[1], [0], [0], [1], [0, 0, 1, 1], [], []>} : vector<16x128xf32>, vector<128x128xf32>, vector<16x128xf32> -> vector<16x128xf32>
    %c0_9 = arith.constant 0 : index
    %c0_10 = arith.constant 0 : index
    %10 = vector.load %arg5[%c0_9, %c0_10] : memref<1x128xf32, #tpu.memory_space<vmem>>, vector<1x128xf32>
    %11 = vector.broadcast %10 : vector<1x128xf32> to vector<16x128xf32>
    %12 = arith.addf %9, %11 : vector<16x128xf32>
    %c0_11 = arith.constant 0 : index
    %c0_12 = arith.constant 0 : index
    %13 = vector.load %arg6[%c0_11, %c0_12] : memref<16x128xf32, #tpu.memory_space<vmem>>, vector<16x128xf32>
    tpu.vector_store %arg6[%c0_11, %c0_12], %12 {strides = array<i32>} : memref<16x128xf32, #tpu.memory_space<vmem>>, vector<16x128xf32>,
    return
  }
  func.func @transform_0(%arg0: i32) -> (i32, i32) {
    %c0_i32 = arith.constant 0 : i32
    %c0_i32_0 = arith.constant 0 : i32
    return %arg0, %c0_i32 : i32, i32
  }
  func.func @transform_1(%arg0: i32) -> (i32, i32) {
    %c0_i32 = arith.constant 0 : i32
    %c0_i32_0 = arith.constant 0 : i32
    %c0_i32_1 = arith.constant 0 : i32
    return %c0_i32, %c0_i32_0 : i32, i32
  }
  func.func @transform_2(%arg0: i32) -> (i32, i32) {
    %c0_i32 = arith.constant 0 : i32
    %c0_i32_0 = arith.constant 0 : i32
    %c0_i32_1 = arith.constant 0 : i32
    return %c0_i32, %c0_i32_0 : i32, i32
  }
  func.func @transform_3(%arg0: i32) -> (i32, i32) {
    %c0_i32 = arith.constant 0 : i32
    %c0_i32_0 = arith.constant 0 : i32
    %c0_i32_1 = arith.constant 0 : i32
    return %c0_i32, %c0_i32_0 : i32, i32
  }
  func.func @transform_4(%arg0: i32) -> (i32, i32) {
    %c0_i32 = arith.constant 0 : i32
    %c0_i32_0 = arith.constant 0 : i32
    %c0_i32_1 = arith.constant 0 : i32
    return %c0_i32, %c0_i32_0 : i32, i32
  }
  func.func @transform_5(%arg0: i32) -> (i32, i32) {
    %c0_i32 = arith.constant 0 : i32
    %c0_i32_0 = arith.constant 0 : i32
    return %arg0, %c0_i32 : i32, i32
  }
}

</mosaic_0001>

<bundles_post_ra>
// kernel: positionwise_feed_forward.1
= control target key start
LH: loop header
LB: loop body
LE: loop exit
PB: predicated region body
PF: predicated region fallthrough
CT: control target
= control target key end

     0   :  { %s478_s1 = inlined_call_operand.vmem [shape: f32[128,128], index: 1, kind: input, shape index: {}]   ;;  %s479_s0 = inlined_call_operand.vmem [shape: f32[16,128], index: 0, kind: input, shape index: {}]   ;;  %s480_s3 = inlined_call_operand.vmem [shape: f32[128,128], index: 3, kind: input, shape index: {}]   ;;  %s481_s2 = inlined_call_operand.vmem [shape: f32[1,128], index: 2, kind: input, shape index: {}]   ;;  %s482_s4 = inlined_call_operand.vmem [shape: f32[1,128], index: 4, kind: input, shape index: {}]   ;;  %s483_s5 = inlined_call_operand.vmem [shape: f32[16,128], index: 5, kind: output, shape index: {}]  }
   0x1   :  { %v37_v0 = vld [vmem:[%s478_s1 + $0x78] sm:$0xff]  ;;  %v36_v1 = vld [vmem:[%s478_s1 + $0x70] sm:$0xff]  ;;  %v35_v2 = vld [vmem:[%s478_s1 + $0x68] sm:$0xff] }
   0x2   :  { %264 = vmatprep.subr.mxu0 %v37_v0  ;;  %v34_v3 = vld [vmem:[%s478_s1 + $0x60] sm:$0xff]  ;;  %v33_v5 = vld [vmem:[%s478_s1 + $0x58] sm:$0xff]  ;;  %v136_v7 = vld [vmem:[%s480_s3 + $0x70] sm:$0xff] }
   0x3   :  { %265 = vmatpush3.msra.mxu0 %v37_v0  ;;  %v20_v4 = vld [vmem:[%s479_s0] sm:$0xff]  ;;  %v137_v6 = vld [vmem:[%s480_s3 + $0x78] sm:$0xff]  ;;  %v32_v8 = vld [vmem:[%s478_s1 + $0x50] sm:$0xff] }
   0x4   :  { %266 = vmatprep.subr.mxu0 %v36_v1  ;;  %296 = vmatprep.mubr.f32.mxu0 %v20_v4  ;;  %v135_v9 = vld [vmem:[%s480_s3 + $0x68] sm:$0xff]  ;;  %v134_v11 = vld [vmem:[%s480_s3 + $0x60] sm:$0xff]  ;;  %v133_v13 = vld [vmem:[%s480_s3 + $0x58] sm:$0xff] }
   0x5   :  { %267 = vmatpush3.msra.mxu0 %v36_v1  ;;  %299 = vmatprep.subr.mxu1 %v137_v6  ;;  %v31_v10 = vld [vmem:[%s478_s1 + $0x48] sm:$0xff]  ;;  %v30_v12 = vld [vmem:[%s478_s1 + $0x40] sm:$0xff]  ;;  %v29_v14 = vld [vmem:[%s478_s1 + $0x38] sm:$0xff] }
   0x6   :  { %268 = vmatprep.subr.mxu0 %v35_v2  ;;  %300 = vmatpush3.msra.mxu1 %v137_v6  ;;  %v132_v15 = vld [vmem:[%s480_s3 + $0x50] sm:$0xff]  ;;  %v131_v17 = vld [vmem:[%s480_s3 + $0x48] sm:$0xff]  ;;  %v130_v19 = vld [vmem:[%s480_s3 + $0x40] sm:$0xff] }
   0x7   :  { %269 = vmatpush3.msra.mxu0 %v35_v2  ;;  %301 = vmatprep.subr.mxu1 %v136_v7  ;;  %v28_v16 = vld [vmem:[%s478_s1 + $0x30] sm:$0xff]  ;;  %v27_v18 = vld [vmem:[%s478_s1 + $0x28] sm:$0xff]  ;;  %v26_v20 = vld [vmem:[%s478_s1 + $0x20] sm:$0xff] }
   0x8   :  { %270 = vmatprep.subr.mxu0 %v34_v3  ;;  %302 = vmatpush3.msra.mxu1 %v136_v7  ;;  %v129_v21 = vld [vmem:[%s480_s3 + $0x38] sm:$0xff]  ;;  %v128_v23 = vld [vmem:[%s480_s3 + $0x30] sm:$0xff]  ;;  %v127_v25 = vld [vmem:[%s480_s3 + $0x28] sm:$0xff] }
   0x9   :  { %271 = vmatpush3.msra.mxu0 %v34_v3  ;;  %303 = vmatprep.subr.mxu1 %v135_v9  ;;  %v25_v22 = vld [vmem:[%s478_s1 + $0x18] sm:$0xff]  ;;  %v24_v24 = vld [vmem:[%s478_s1 + $0x10] sm:$0xff]  ;;  %v23_v26 = vld [vmem:[%s478_s1 + $0x8] sm:$0xff] }
   0xa   :  { %272 = vmatprep.subr.mxu0 %v33_v5  ;;  %304 = vmatpush3.msra.mxu1 %v135_v9  ;;  %v126_v27 = vld [vmem:[%s480_s3 + $0x20] sm:$0xff]  ;;  %v21_v29 = vld [vmem:[%s479_s0 + $0x8] sm:$0xff]  ;;  %v125_v30 = vld [vmem:[%s480_s3 + $0x18] sm:$0xff] }
   0xb   :  { %273 = vmatpush3.msra.mxu0 %v33_v5  ;;  %305 = vmatprep.subr.mxu1 %v134_v11  ;;  %v22_v28 = vld [vmem:[%s478_s1] sm:$0xff]  ;;  %v124_v31 = vld [vmem:[%s480_s3 + $0x10] sm:$0xff]  ;;  %v123_v32 = vld [vmem:[%s480_s3 + $0x8] sm:$0xff] }
   0xc   :  { %274 = vmatprep.subr.mxu0 %v32_v8  ;;  %306 = vmatpush3.msra.mxu1 %v134_v11  ;;  %v122_v33 = vld [vmem:[%s480_s3] sm:$0xff] }
   0xd   :  { %275 = vmatpush3.msra.mxu0 %v32_v8  ;;  %307 = vmatprep.subr.mxu1 %v133_v13  ;;  %v226_v34 = vld [vmem:[%s481_s2] ss:$0 sm:$0xff] }
   0xe   :  { %276 = vmatprep.subr.mxu0 %v31_v10  ;;  %308 = vmatpush3.msra.mxu1 %v133_v13  ;;  %v227_v41 = vld [vmem:[%s482_s4] ss:$0 sm:$0xff] }
   0xf   :  { %277 = vmatpush3.msra.mxu0 %v31_v10  ;;  %309 = vmatprep.subr.mxu1 %v132_v15 }
  0x10   :  { %278 = vmatprep.subr.mxu0 %v30_v12  ;;  %310 = vmatpush3.msra.mxu1 %v132_v15 }
  0x11   :  { %279 = vmatpush3.msra.mxu0 %v30_v12  ;;  %311 = vmatprep.subr.mxu1 %v131_v17 }
  0x12   :  { %280 = vmatprep.subr.mxu0 %v29_v14  ;;  %312 = vmatpush3.msra.mxu1 %v131_v17 }
  0x13   :  { %281 = vmatpush3.msra.mxu0 %v29_v14  ;;  %313 = vmatprep.subr.mxu1 %v130_v19 }
  0x14   :  { %282 = vmatprep.subr.mxu0 %v28_v16  ;;  %314 = vmatpush3.msra.mxu1 %v130_v19 }
  0x15   :  { %283 = vmatpush3.msra.mxu0 %v28_v16  ;;  %315 = vmatprep.subr.mxu1 %v129_v21 }
  0x16   :  { %284 = vmatprep.subr.mxu0 %v27_v18  ;;  %316 = vmatpush3.msra.mxu1 %v129_v21 }
  0x17   :  { %285 = vmatpush3.msra.mxu0 %v27_v18  ;;  %317 = vmatprep.subr.mxu1 %v128_v23 }
  0x18   :  { %286 = vmatprep.subr.mxu0 %v26_v20  ;;  %318 = vmatpush3.msra.mxu1 %v128_v23 }
  0x19   :  { %287 = vmatpush3.msra.mxu0 %v26_v20  ;;  %319 = vmatprep.subr.mxu1 %v127_v25 }
  0x1a   :  { %288 = vmatprep.subr.mxu0 %v25_v22  ;;  %320 = vmatpush3.msra.mxu1 %v127_v25 }
  0x1b   :  { %289 = vmatpush3.msra.mxu0 %v25_v22  ;;  %321 = vmatprep.subr.mxu1 %v126_v27 }
  0x1c   :  { %290 = vmatprep.subr.mxu0 %v24_v24  ;;  %322 = vmatpush3.msra.mxu1 %v126_v27 }
  0x1d   :  { %291 = vmatpush3.msra.mxu0 %v24_v24  ;;  %323 = vmatprep.subr.mxu1 %v125_v30 }
  0x1e   :  { %292 = vmatprep.subr.mxu0 %v23_v26  ;;  %324 = vmatpush3.msra.mxu1 %v125_v30 }
  0x1f   :  { %293 = vmatpush3.msra.mxu0 %v23_v26  ;;  %325 = vmatprep.subr.mxu1 %v124_v31 }
  0x20   :  { %294 = vmatprep.subr.mxu0 %v22_v28  ;;  %326 = vmatpush3.msra.mxu1 %v124_v31 }
  0x21   :  { %295 = vmatpush3.msra.mxu0 %v22_v28  ;;  %327 = vmatprep.subr.mxu1 %v123_v32 }
  0x22   :  { %297 = vmatmul.mubr.f32.vlgmr.msra.gmra.mxu0 %v21_v29  ;;  %328 = vmatpush3.msra.mxu1 %v123_v32 }
  0x23   :  { %329 = vmatprep.subr.mxu1 %v122_v33 }
  0x24   :  { %330 = vmatpush3.msra.mxu1 %v122_v33 }
  0xe2   :  { %v298_v35 = vpop.f32.mrf.mxu0 }
  0xe3   :  { %v117_v36 = vadd.f32 %v298_v35, %v226_v34 }
  0xe4   :  { %v111_v37 = vpop.f32.mrf.mxu0 }
  0xe5   :  { %v112_v38 = vadd.f32 %v226_v34, %v111_v37  ;;  %v121_v40 = vmax.f32 %v117_v36, 0.0 }
  0xe7   :  { %v120_v39 = vmax.f32 %v112_v38, 0.0 }
  0xe9   :  { %331 = vmatprep.mubr.f32.mxu1 %v120_v39 }
  0xea   :  { %332 = vmatmul.mubr.f32.vlgmr.msra.gmra.mxu1 %v121_v40 }
 0x1aa   :  { %v333_v42 = vpop.f32.mrf.mxu1 }
 0x1ab   :  { %v217_v43 = vadd.f32 %v333_v42, %v227_v41 }
 0x1ac   :  { %v211_v44 = vpop.f32.mrf.mxu1 }
 0x1ad   :  { %221 = vst [vmem:[%s483_s5 + $0x8] sm:$0xff] %v217_v43  ;;  %v212_v45 = vadd.f32 %v227_v41, %v211_v44 }
 0x1af   :  { %220 = vst [vmem:[%s483_s5] sm:$0xff] %v212_v45 }

</bundles_post_ra>
